<compile_context>
chip_gen: v7x
topology: tpu7x:2x2x1
jax: 0.10.0
libtpu: 0.0.40
codegen_flags: <defaults>
</compile_context>

<pallas_src>
import functools

import jax
import jax.numpy as jnp
from jax.experimental import pallas as pl
from jax.experimental.pallas import tpu as pltpu


def _ceil8(n: int) -> int:
    return -(-n // 8) * 8


def aux_layer_kernel(x_ref, ea_ref, srcoh_ref, dstT_ref, params_ref, out_ref,
                     *, layout1, layout2):
    # One-hot matrices arrive in bf16 (exact 0/1); cast once to f32 so the
    # gather/scatter stays bit-exact vs. the f32 reference and all elementwise
    # work stays f32 (no bf16 VPU on v5e).
    src_oh = srcoh_ref[...].astype(jnp.float32)        # (E, N)
    dst_T = dstT_ref[...].astype(jnp.float32)          # (N, E)
    ea = ea_ref[...]                                   # (E, 4)

    def carve(layout):
        # Static (Python int) row/col offsets -> compile-time slices of the
        # single packed parameter slab.
        return [params_ref[r:r + h, :w] for (r, h, w) in layout]

    def nnconv_relu(x_nodes, layout):
        w1, b1, w2r, b2r, root, rb, r_rep, t_tile = carve(layout)
        # Edge MLP first Linear + ReLU: (E, hidden).
        h_e = jnp.maximum(
            jnp.dot(ea, w1, preferred_element_type=jnp.float32) + b1, 0.0)
        # Gather source-node features via one-hot matmul (MXU gather): (E, in).
        x_src = jnp.dot(src_oh, x_nodes, preferred_element_type=jnp.float32)
        # Khatri-Rao product t[e, i*H+k] = x_src[e,i] * h_e[e,k], built on the
        # MXU with constant 0/1 replication (r_rep) / tiling (t_tile) matrices
        # plus one elementwise multiply (no slice/broadcast/concat chain).
        t = (jnp.dot(x_src, r_rep, preferred_element_type=jnp.float32)
             * jnp.dot(h_e, t_tile, preferred_element_type=jnp.float32))
        # Per-edge message as ONE MXU contraction over K = in*hidden:
        #   msg_e = x_src_e @ (h_e @ w2 + b2).reshape(in, out)
        #         = vec(x_src_e (x) h_e) @ w2r  +  x_src_e @ b2r
        msgs = (jnp.dot(t, w2r, preferred_element_type=jnp.float32)
                + jnp.dot(x_src, b2r, preferred_element_type=jnp.float32))
        # Scatter-add to destination nodes ('add' aggregation): (N, out).
        aggr = jnp.dot(dst_T, msgs, preferred_element_type=jnp.float32)
        # Root transform + bias, then the outer ReLU of AuxiliaryLayer.
        root_out = (jnp.dot(x_nodes, root,
                            preferred_element_type=jnp.float32) + rb)
        return jnp.maximum(aggr + root_out, 0.0)

    # Both NNConv+ReLU layers fused: h1 never leaves VMEM.
    h1 = nnconv_relu(x_ref[...], layout1)
    out_ref[...] = nnconv_relu(h1, layout2)


def make_nnconv_params(key, in_dim, out_dim, edge_dim, hidden):
    ks = jax.random.split(key, 6)
    s = 0.1
    return {
        "w1": s * jax.random.normal(ks[0], (edge_dim, hidden), jnp.float32),
        "b1": s * jax.random.normal(ks[1], (1, hidden), jnp.float32),
        "w2": s * jax.random.normal(ks[2], (hidden, in_dim * out_dim), jnp.float32),
        "b2": s * jax.random.normal(ks[3], (1, in_dim * out_dim), jnp.float32),
        "root": s * jax.random.normal(ks[4], (in_dim, out_dim), jnp.float32),
        "root_bias": s * jax.random.normal(ks[5], (1, out_dim), jnp.float32),
    }


def _layer_blocks(p, in_dim, out_dim, hidden, out_pad):
    """Per-layer parameter blocks, in the order the kernel consumes them."""
    # w2r[i*hidden + k, o] = w2[k, i*out + o]  (matches t ordering in-kernel)
    w2r = (p["w2"].reshape(hidden, in_dim, out_dim)
           .transpose(1, 0, 2).reshape(in_dim * hidden, out_dim))
    b2r = p["b2"].reshape(in_dim, out_dim)
    root = p["root"]
    rb = p["root_bias"]
    if out_pad > out_dim:
        padc = [(0, 0), (0, out_pad - out_dim)]
        w2r, b2r, root, rb = [jnp.pad(a, padc) for a in (w2r, b2r, root, rb)]
    # Constant 0/1 matrices driving the Khatri-Rao-on-MXU construction of t:
    #   r_rep[j, i*hidden + k] = (j == i)   -> replicates x_src columns
    #   t_tile[m, i*hidden + k] = (m == k)  -> tiles h_e across feature blocks
    r_rep = jnp.repeat(jnp.eye(in_dim, dtype=jnp.float32), hidden, axis=1)
    t_tile = jnp.tile(jnp.eye(hidden, dtype=jnp.float32), (1, in_dim))
    return [p["w1"], p["b1"], w2r, b2r, root, rb, r_rep, t_tile]


def _pack_blocks(blocks, width):
    """Stack blocks vertically (8-row aligned, zero-padded to `width` lanes)
    into one operand; returns (packed, tuple of (row_off, rows, cols))."""
    layout = []
    rows = 0
    for a in blocks:
        layout.append((rows, int(a.shape[0]), int(a.shape[1])))
        rows += _ceil8(int(a.shape[0]))
    packed = jnp.zeros((rows, width), jnp.float32)
    for (r, h, w), a in zip(layout, blocks):
        packed = packed.at[r:r + h, :w].set(a.astype(jnp.float32))
    return packed, tuple(layout)


def auxiliary_layer_forward(x, edge_index, edge_attr, p1, p2, dim):
    n_nodes, num_node_features = x.shape
    hidden = dim
    # Lane-dense final store: pad layer-2 output columns to a multiple of 128.
    out_pad = 128 * pl.cdiv(dim, 128)

    src, dst = edge_index[0], edge_index[1]
    # One-hot gather/scatter matrices in bf16 (0/1 exact -> half HBM/VMEM).
    src_oh = jax.nn.one_hot(src, n_nodes, dtype=jnp.bfloat16)        # (E, N)
    dst_oh_T = jax.nn.one_hot(dst, n_nodes, dtype=jnp.bfloat16).T    # (N, E)

    blocks1 = _layer_blocks(p1, num_node_features, dim, hidden, dim)   # unpadded
    blocks2 = _layer_blocks(p2, dim, dim, hidden, out_pad)             # padded out
    width = 128 * pl.cdiv(max(int(a.shape[1]) for a in blocks1 + blocks2), 128)
    n1 = len(blocks1)
    packed, layout = _pack_blocks(blocks1 + blocks2, width)
    layout1, layout2 = layout[:n1], layout[n1:]

    kernel = functools.partial(aux_layer_kernel,
                               layout1=layout1, layout2=layout2)
    vmem = pl.BlockSpec(memory_space=pltpu.MemorySpace.VMEM)
    out_padded = pl.pallas_call(
        kernel,
        out_shape=jax.ShapeDtypeStruct((n_nodes, out_pad), jnp.float32),
        in_specs=[vmem] * 5,
        out_specs=vmem,
    )(x, edge_attr, src_oh, dst_oh_T, packed)
    return out_padded[:, :dim]


def nnconv_relu_reference(x, edge_attr, src, dst, params, in_dim, out_dim):
    # Pure-JAX reference of NNConv + ReLU for validation (PyG semantics).
    h = jnp.maximum(edge_attr @ params["w1"] + params["b1"], 0.0)
    w_flat = h @ params["w2"] + params["b2"]
    w_e = w_flat.reshape(-1, in_dim, out_dim)
    msgs = jnp.einsum("ei,eio->eo", x[src], w_e)
    aggr = jnp.zeros((x.shape[0], out_dim), jnp.float32).at[dst].add(msgs)
    return jnp.maximum(aggr + x @ params["root"] + params["root_bias"], 0.0)


if __name__ == "__main__":
    NUM_NODE_FEATURES = 11
    NUM_EDGE_FEATURES = 4
    DIM = 16
    N_NODES = 8
    N_EDGES = 16

    key = jax.random.PRNGKey(0)
    kx, ke, kp1, kp2 = jax.random.split(key, 4)

    x = jax.random.normal(kx, (N_NODES, NUM_NODE_FEATURES), jnp.float32)
    edge_attr = jax.random.normal(ke, (N_EDGES, NUM_EDGE_FEATURES), jnp.float32)
    src = jnp.arange(N_EDGES, dtype=jnp.int32) % N_NODES
    dst = (jnp.arange(N_EDGES, dtype=jnp.int32) * 5 + 2) % N_NODES
    edge_index = jnp.stack([src, dst], axis=0)

    p1 = make_nnconv_params(kp1, NUM_NODE_FEATURES, DIM, NUM_EDGE_FEATURES, DIM)
    p2 = make_nnconv_params(kp2, DIM, DIM, NUM_EDGE_FEATURES, DIM)

    out = auxiliary_layer_forward(x, edge_index, edge_attr, p1, p2, DIM)
    out = jax.block_until_ready(out)

    # Validate against the pure-JAX reference. Tolerance allows for the
    # reassociated (fused K = in*hidden) MXU contraction vs. the reference's
    # two-step contraction under default TPU matmul precision.
    h_ref = nnconv_relu_reference(x, edge_attr, src, dst, p1,
                                  NUM_NODE_FEATURES, DIM)
    out_ref = nnconv_relu_reference(h_ref, edge_attr, src, dst, p2, DIM, DIM)
    assert out.shape == (N_NODES, DIM)
    assert jnp.allclose(out, out_ref, rtol=1e-3, atol=1e-3), "mismatch vs reference"

    print("KERNEL_OK")
</pallas_src>

<mosaic_0001>
module attributes {stable_mosaic.version = 11 : i64} {
  func.func @aux_layer_kernel(%arg0: memref<8x11xf32, #tpu.memory_space<vmem>>, %arg1: memref<16x4xf32, #tpu.memory_space<vmem>>, %arg2: memref<16x8xbf16, #tpu.memory_space<vmem>>, %arg3: memref<8x16xbf16, #tpu.memory_space<vmem>>, %arg4: memref<608x256xf32, #tpu.memory_space<vmem>>, %arg5: memref<8x128xf32, #tpu.memory_space<vmem>>) attributes {dimension_semantics = [], scalar_prefetch = 0 : i64, scratch_operands = 0 : i64, tpu.core_type = #tpu.core_type<tc>} {
    %c0 = arith.constant 0 : index
    %c0_0 = arith.constant 0 : index
    %0 = vector.load %arg2[%c0, %c0_0] : memref<16x8xbf16, #tpu.memory_space<vmem>>, vector<16x8xbf16>
    %1 = arith.extf %0 : vector<16x8xbf16> to vector<16x8xf32>
    %c0_1 = arith.constant 0 : index
    %c0_2 = arith.constant 0 : index
    %2 = vector.load %arg3[%c0_1, %c0_2] : memref<8x16xbf16, #tpu.memory_space<vmem>>, vector<8x16xbf16>
    %3 = arith.extf %2 : vector<8x16xbf16> to vector<8x16xf32>
    %c0_3 = arith.constant 0 : index
    %c0_4 = arith.constant 0 : index
    %4 = vector.load %arg1[%c0_3, %c0_4] : memref<16x4xf32, #tpu.memory_space<vmem>>, vector<16x4xf32>
    %c0_5 = arith.constant 0 : index
    %c0_6 = arith.constant 0 : index
    %5 = vector.load %arg0[%c0_5, %c0_6] : memref<8x11xf32, #tpu.memory_space<vmem>>, vector<8x11xf32>
    %c0_7 = arith.constant 0 : index
    %c0_8 = arith.constant 0 : index
    %6 = vector.load %arg4[%c0_7, %c0_8] : memref<608x256xf32, #tpu.memory_space<vmem>>, vector<4x16xf32>
    %c8 = arith.constant 8 : index
    %c0_9 = arith.constant 0 : index
    %7 = vector.load %arg4[%c8, %c0_9] : memref<608x256xf32, #tpu.memory_space<vmem>>, vector<1x16xf32>
    %c16 = arith.constant 16 : index
    %c0_10 = arith.constant 0 : index
    %8 = vector.load %arg4[%c16, %c0_10] : memref<608x256xf32, #tpu.memory_space<vmem>>, vector<176x16xf32>
    %c192 = arith.constant 192 : index
    %c0_11 = arith.constant 0 : index
    %9 = vector.load %arg4[%c192, %c0_11] : memref<608x256xf32, #tpu.memory_space<vmem>>, vector<11x16xf32>
    %c208 = arith.constant 208 : index
    %c0_12 = arith.constant 0 : index
    %10 = vector.load %arg4[%c208, %c0_12] : memref<608x256xf32, #tpu.memory_space<vmem>>, vector<11x16xf32>
    %c224 = arith.constant 224 : index
    %c0_13 = arith.constant 0 : index
    %11 = vector.load %arg4[%c224, %c0_13] : memref<608x256xf32, #tpu.memory_space<vmem>>, vector<1x16xf32>
    %c232 = arith.constant 232 : index
    %c0_14 = arith.constant 0 : index
    %12 = vector.load %arg4[%c232, %c0_14] : memref<608x256xf32, #tpu.memory_space<vmem>>, vector<11x176xf32>
    %c248 = arith.constant 248 : index
    %c0_15 = arith.constant 0 : index
    %13 = vector.load %arg4[%c248, %c0_15] : memref<608x256xf32, #tpu.memory_space<vmem>>, vector<16x176xf32>
    %cst = arith.constant dense<0.000000e+00> : vector<16x16xf32>
    %14 = tpu.matmul %4, %6, %cst {dimension_numbers = #tpu.dot_dimension_numbers<[1], [0], [0], [1], [0, 0, 1, 1], [], []>} : vector<16x4xf32>, vector<4x16xf32>, vector<16x16xf32> -> vector<16x16xf32>
    %15 = vector.broadcast %7 : vector<1x16xf32> to vector<16x16xf32>
    %16 = arith.addf %14, %15 : vector<16x16xf32>
    %cst_16 = arith.constant 0.000000e+00 : f32
    %17 = vector.broadcast %cst_16 : f32 to vector<16x16xf32>
    %18 = arith.maximumf %16, %17 : vector<16x16xf32>
    %cst_17 = arith.constant dense<0.000000e+00> : vector<16x11xf32>
    %19 = tpu.matmul %1, %5, %cst_17 {dimension_numbers = #tpu.dot_dimension_numbers<[1], [0], [0], [1], [0, 0, 1, 1], [], []>} : vector<16x8xf32>, vector<8x11xf32>, vector<16x11xf32> -> vector<16x11xf32>
    %cst_18 = arith.constant dense<0.000000e+00> : vector<16x176xf32>
    %20 = tpu.matmul %19, %12, %cst_18 {dimension_numbers = #tpu.dot_dimension_numbers<[1], [0], [0], [1], [0, 0, 1, 1], [], []>} : vector<16x11xf32>, vector<11x176xf32>, vector<16x176xf32> -> vector<16x176xf32>
    %cst_19 = arith.constant dense<0.000000e+00> : vector<16x176xf32>
    %21 = tpu.matmul %18, %13, %cst_19 {dimension_numbers = #tpu.dot_dimension_numbers<[1], [0], [0], [1], [0, 0, 1, 1], [], []>} : vector<16x16xf32>, vector<16x176xf32>, vector<16x176xf32> -> vector<16x176xf32>
    %22 = arith.mulf %20, %21 : vector<16x176xf32>
    %cst_20 = arith.constant dense<0.000000e+00> : vector<16x16xf32>
    %23 = tpu.matmul %22, %8, %cst_20 {dimension_numbers = #tpu.dot_dimension_numbers<[1], [0], [0], [1], [0, 0, 1, 1], [], []>} : vector<16x176xf32>, vector<176x16xf32>, vector<16x16xf32> -> vector<16x16xf32>
    %cst_21 = arith.constant dense<0.000000e+00> : vector<16x16xf32>
    %24 = tpu.matmul %19, %9, %cst_21 {dimension_numbers = #tpu.dot_dimension_numbers<[1], [0], [0], [1], [0, 0, 1, 1], [], []>} : vector<16x11xf32>, vector<11x16xf32>, vector<16x16xf32> -> vector<16x16xf32>
    %25 = arith.addf %23, %24 : vector<16x16xf32>
    %cst_22 = arith.constant dense<0.000000e+00> : vector<8x16xf32>
    %26 = tpu.matmul %3, %25, %cst_22 {dimension_numbers = #tpu.dot_dimension_numbers<[1], [0], [0], [1], [0, 0, 1, 1], [], []>} : vector<8x16xf32>, vector<16x16xf32>, vector<8x16xf32> -> vector<8x16xf32>
    %cst_23 = arith.constant dense<0.000000e+00> : vector<8x16xf32>
    %27 = tpu.matmul %5, %10, %cst_23 {dimension_numbers = #tpu.dot_dimension_numbers<[1], [0], [0], [1], [0, 0, 1, 1], [], []>} : vector<8x11xf32>, vector<11x16xf32>, vector<8x16xf32> -> vector<8x16xf32>
    %28 = vector.broadcast %11 : vector<1x16xf32> to vector<8x16xf32>
    %29 = arith.addf %27, %28 : vector<8x16xf32>
    %30 = arith.addf %26, %29 : vector<8x16xf32>
    %cst_24 = arith.constant 0.000000e+00 : f32
    %31 = vector.broadcast %cst_24 : f32 to vector<8x16xf32>
    %32 = arith.maximumf %30, %31 : vector<8x16xf32>
    %c264 = arith.constant 264 : index
    %c0_25 = arith.constant 0 : index
    %33 = vector.load %arg4[%c264, %c0_25] : memref<608x256xf32, #tpu.memory_space<vmem>>, vector<4x16xf32>
    %c272 = arith.constant 272 : index
    %c0_26 = arith.constant 0 : index
    %34 = vector.load %arg4[%c272, %c0_26] : memref<608x256xf32, #tpu.memory_space<vmem>>, vector<1x16xf32>
    %c280 = arith.constant 280 : index
    %c0_27 = arith.constant 0 : index
    %35 = vector.load %arg4[%c280, %c0_27] : memref<608x256xf32, #tpu.memory_space<vmem>>, vector<256x128xf32>
    %c536 = arith.constant 536 : index
    %c0_28 = arith.constant 0 : index
    %36 = vector.load %arg4[%c536, %c0_28] : memref<608x256xf32, #tpu.memory_space<vmem>>, vector<16x128xf32>
    %c552 = arith.constant 552 : index
    %c0_29 = arith.constant 0 : index
    %37 = vector.load %arg4[%c552, %c0_29] : memref<608x256xf32, #tpu.memory_space<vmem>>, vector<16x128xf32>
    %c568 = arith.constant 568 : index
    %c0_30 = arith.constant 0 : index
    %38 = vector.load %arg4[%c568, %c0_30] : memref<608x256xf32, #tpu.memory_space<vmem>>, vector<1x128xf32>
    %c576 = arith.constant 576 : index
    %c0_31 = arith.constant 0 : index
    %39 = vector.load %arg4[%c576, %c0_31] : memref<608x256xf32, #tpu.memory_space<vmem>>, vector<16x256xf32>
    %c592 = arith.constant 592 : index
    %c0_32 = arith.constant 0 : index
    %40 = vector.load %arg4[%c592, %c0_32] : memref<608x256xf32, #tpu.memory_space<vmem>>, vector<16x256xf32>
    %cst_33 = arith.constant dense<0.000000e+00> : vector<16x16xf32>
    %41 = tpu.matmul %4, %33, %cst_33 {dimension_numbers = #tpu.dot_dimension_numbers<[1], [0], [0], [1], [0, 0, 1, 1], [], []>} : vector<16x4xf32>, vector<4x16xf32>, vector<16x16xf32> -> vector<16x16xf32>
    %42 = vector.broadcast %34 : vector<1x16xf32> to vector<16x16xf32>
    %43 = arith.addf %41, %42 : vector<16x16xf32>
    %cst_34 = arith.constant 0.000000e+00 : f32
    %44 = vector.broadcast %cst_34 : f32 to vector<16x16xf32>
    %45 = arith.maximumf %43, %44 : vector<16x16xf32>
    %cst_35 = arith.constant dense<0.000000e+00> : vector<16x16xf32>
    %46 = tpu.matmul %1, %32, %cst_35 {dimension_numbers = #tpu.dot_dimension_numbers<[1], [0], [0], [1], [0, 0, 1, 1], [], []>} : vector<16x8xf32>, vector<8x16xf32>, vector<16x16xf32> -> vector<16x16xf32>
    %cst_36 = arith.constant dense<0.000000e+00> : vector<16x256xf32>
    %47 = tpu.matmul %46, %39, %cst_36 {dimension_numbers = #tpu.dot_dimension_numbers<[1], [0], [0], [1], [0, 0, 1, 1], [], []>} : vector<16x16xf32>, vector<16x256xf32>, vector<16x256xf32> -> vector<16x256xf32>
    %cst_37 = arith.constant dense<0.000000e+00> : vector<16x256xf32>
    %48 = tpu.matmul %45, %40, %cst_37 {dimension_numbers = #tpu.dot_dimension_numbers<[1], [0], [0], [1], [0, 0, 1, 1], [], []>} : vector<16x16xf32>, vector<16x256xf32>, vector<16x256xf32> -> vector<16x256xf32>
    %49 = arith.mulf %47, %48 : vector<16x256xf32>
    %cst_38 = arith.constant dense<0.000000e+00> : vector<16x128xf32>
    %50 = tpu.matmul %49, %35, %cst_38 {dimension_numbers = #tpu.dot_dimension_numbers<[1], [0], [0], [1], [0, 0, 1, 1], [], []>} : vector<16x256xf32>, vector<256x128xf32>, vector<16x128xf32> -> vector<16x128xf32>
    %cst_39 = arith.constant dense<0.000000e+00> : vector<16x128xf32>
    %51 = tpu.matmul %46, %36, %cst_39 {dimension_numbers = #tpu.dot_dimension_numbers<[1], [0], [0], [1], [0, 0, 1, 1], [], []>} : vector<16x16xf32>, vector<16x128xf32>, vector<16x128xf32> -> vector<16x128xf32>
    %52 = arith.addf %50, %51 : vector<16x128xf32>
    %cst_40 = arith.constant dense<0.000000e+00> : vector<8x128xf32>
    %53 = tpu.matmul %3, %52, %cst_40 {dimension_numbers = #tpu.dot_dimension_numbers<[1], [0], [0], [1], [0, 0, 1, 1], [], []>} : vector<8x16xf32>, vector<16x128xf32>, vector<8x128xf32> -> vector<8x128xf32>
    %cst_41 = arith.constant dense<0.000000e+00> : vector<8x128xf32>
    %54 = tpu.matmul %32, %37, %cst_41 {dimension_numbers = #tpu.dot_dimension_numbers<[1], [0], [0], [1], [0, 0, 1, 1], [], []>} : vector<8x16xf32>, vector<16x128xf32>, vector<8x128xf32> -> vector<8x128xf32>
    %55 = vector.broadcast %38 : vector<1x128xf32> to vector<8x128xf32>
    %56 = arith.addf %54, %55 : vector<8x128xf32>
    %57 = arith.addf %53, %56 : vector<8x128xf32>
    %cst_42 = arith.constant 0.000000e+00 : f32
    %58 = vector.broadcast %cst_42 : f32 to vector<8x128xf32>
    %59 = arith.maximumf %57, %58 : vector<8x128xf32>
    %c0_43 = arith.constant 0 : index
    %c0_44 = arith.constant 0 : index
    %60 = vector.load %arg5[%c0_43, %c0_44] : memref<8x128xf32, #tpu.memory_space<vmem>>, vector<8x128xf32>
    tpu.vector_store %arg5[%c0_43, %c0_44], %59 {strides = array<i32>} : memref<8x128xf32, #tpu.memory_space<vmem>>, vector<8x128xf32>,
    return
  }
}

</mosaic_0001>

<bundles_post_ra>
// kernel: tpu_custom_call.1
= control target key start
LH: loop header
LB: loop body
LE: loop exit
PB: predicated region body
PF: predicated region fallthrough
CT: control target
= control target key end

     0   :  { %10 = vsyncpa [#allocation3], 0  ;;  %s1939_s0 = inlined_call_operand.vmem [shape: f32[8,11], index: 0, kind: input, shape index: {}]   ;;  %s1940_s1 = inlined_call_operand.vmem [shape: f32[16,4], index: 1, kind: input, shape index: {}]   ;;  %s1941_s2 = inlined_call_operand.vmem [shape: bf16[16,8], index: 2, kind: input, shape index: {}]   ;;  %s1942_s3 = inlined_call_operand.vmem [shape: bf16[8,16], index: 3, kind: input, shape index: {}]   ;;  %s1943_s4 = inlined_call_operand.hbm [shape: f32[608,256], index: 4, kind: input, shape index: {}]   ;;  %s1944_s5 = inlined_call_operand.hbm [shape: f32[8,128], index: 5, kind: output, shape index: {}]  }
   0x1   :  { %11 = vsyncpa [#allocation4], 0  ;;  %s1757_s18 = smov [#allocation2]   ;;  %s1709_s22 = scalar_lea.hbm %s1943_s4, 19456 }
   0x2   :  { %s25_s19 = sshll.u32 %s1757_s18, 4  ;;  %p1710_p0 = scmp.ne.s32.totalorder %s1943_s4, %s1709_s22  ;;  %s26_s19 = int_to_ptr.vmem [resolvable:$true] %s25_s19 }
   0x3   :  { %p1713_p1 = scmp.lt.u32.totalorder %s1709_s22, %s1943_s4 }
   0x5   :  { %p1715_p2 = pnand %p1713_p1, %p1710_p0 }
   0x7   :  { %1718 = shalt.err (!%p1715_p2)
}
   0x8   :  { %s1719_s27 = scalar_lea.vmem %s26_s19, 19456  ;;  %p1724_p4 = scmp.lt.s32.totalorder %s26_s19, %s26_s19 }
   0x9   :  { %p1720_p3 = scmp.ne.s32.totalorder %s26_s19, %s1719_s27  ;;  %p1725_p5 = scmp.lt.s32.totalorder %s1719_s27, %s1719_s27 }
   0xb   :  { %p1726_p6 = por %p1725_p5, %p1724_p4 }
   0xd   :  { %p1727_p7 = pnand %p1726_p6, %p1720_p3 }
   0xf   :  { %1730 = shalt.err (!%p1727_p7)
}
  0x10   :  { %s1758_s28 = smov 256   ;;  %s1759_s29 = smov 16  }
  0x11   :  { %31 = dma.hbm_to_vmem [thread:$0]  %s1943_s4, 19456, %s26_s19, [#allocation3], %s1758_s28, %s1758_s28, %s1759_s29  }
  0x12   :  { %1753 = dma.done.wait [#allocation3], 19456  }
  0x13   :  { %1754 = vsyncadd [#allocation3], 4294947840  ;;  %vm258_vm0 = vcmask 1042432   ;;  %vm88_vm1 = vcmask 1043456   ;;  %vm1760_vm2 = vmmov 1   ;;  %v1814_v1 = vld [vmem:[%s1939_s0] sm:$0xff] }
  0x14   :  { %vm1807_vm3 = vmpackc.low %vm258_vm0, %vm1760_vm2  ;;  %v1819_v2 = vld [vmem:[%s1941_s2] sm:$0xff]   ;;  %vm169_vm4 = vcmask 64512   ;;  %vm81_vm5 = vcmask 31744   ;;  %1533 = vmatprep.subr.mxu1 %v1814_v1  ;;  %v1833_v7 = vld [vmem:[%s1940_s1 + $0x8] sm:$0xff]  ;;  %v1761_v17 = vmov 0.0   ;;  %v1762_v21 = vmov 0.0|0.0  }
  0x15   :  { %v44_v3 = vld [vmem:[#allocation2] sm:$0xf]  ;;  %v1456_v4 = vunpack.c.l.bf16 %v1819_v2  ;;  %v1457_v5 = vunpack.c.h.bf16 %v1819_v2  ;;  %v74_v8 = vld [vmem:[#allocation2 + $0x1d8] sm:$0xff]  ;;  %1534 = vmatpush3.msra.mxu1 %v1814_v1  ;;  %v76_v9 = vld [vmem:[#allocation2 + $0x1e8] sm:$0x7]  ;;  %vm251_vm6 = vcmask 89088  }
  0x16   :  { %1528 = vmatprep.subr.msk.mxu0 %vm88_vm1, %v44_v3  ;;  %v1828_v6 = vld [vmem:[%s1940_s1] sm:$0xff]  ;;  %v73_v10 = vld [vmem:[#allocation2 + $0x1d0] sm:$0xff]  ;;  %v1590_v12 = vpack.c.bf16 %v76_v9, %v74_v8  ;;  %v78_v18 = vld [vmem:[#allocation2 + $0x1f8] sm:$0xff]  ;;  %vm342_vm7 = vcmask 130048   ;;  %vm508_vm8 = vcmask 392192   ;;  %vm1763_vm9 = vmmov 0  }
  0x17   :  { %1529 = vmatpush3.msk.msra.mxu0 %vm88_vm1, %v44_v3  ;;  %v75_v11 = vld [vmem:[#allocation2 + $0x1e0] sm:$0x7]  ;;  %1535 = vmatprep.mubr.msk.f32.mxu1 %vm169_vm4, %v1456_v4  ;;  %v69_v15 = vld [vmem:[#allocation2 + $0x190] sm:$0x7]  ;;  %v80_v19 = vld [vmem:[#allocation2 + $0x208] sm:$0xff] }
  0x18   :  { %1530 = vmatprep.mubr.msk.f32.mxu0 %vm81_vm5, %v1828_v6  ;;  %v1593_v13 = vpack.c.bf16 %v75_v11, %v73_v10  ;;  %v68_v14 = vld [vmem:[#allocation2 + $0x180] sm:$0xff]  ;;  %1536 = vmatmul.mubr.msk.f32.vlgmr.msra.gmra.mrb[0].mxu1 %vm169_vm4, %v1457_v5  ;;  %v1596_v20 = vpack.c.bf16 %v80_v19, %v78_v18  ;;  %v77_v22 = vld [vmem:[#allocation2 + $0x1f0] sm:$0xff] }
  0x19   :  { %1531 = vmatmul.mubr.msk.f32.vlgmr.msra.gmra.mrb[0].mxu0 %vm81_vm5, %v1833_v7  ;;  %v1600_v16 = vpack.c.bf16 %v69_v15, %v68_v14  ;;  %1592 = vmatprep.subr.msk.bf16.mxu1 %vm1807_vm3, %v1590_v12  ;;  %v79_v23 = vld [vmem:[#allocation2 + $0x200] sm:$0xff]  ;;  %v45_v24 = vld [vmem:[#allocation2 + $0x10] ss:$0 sm:$0xff] }
  0x1a   :  { %1595 = vmatpush1.bf16.msk.msra.mxu1 %vm1807_vm3, %v1593_v13  ;;  %329 = vmatprep.mubr.f32.mxu1 %v1761_v17  ;;  %v1598_v27 = vpack.c.bf16 %v79_v23, %v77_v22  ;;  %v46_v31 = vld [vmem:[#allocation2 + $0x20] sm:$0xff]  ;;  %v47_v32 = vld [vmem:[#allocation2 + $0x30] sm:$0xff] }
  0x1b   :  { %1602 = vmatprep.subr.msk.bf16.mxu0 %vm1807_vm3, %v1600_v16  ;;  %1597 = vmatprep.subr.bf16.mxu1 %v1596_v20  ;;  %v1607_v34 = vpack.c.bf16 %v47_v32, %v46_v31  ;;  %v48_v36 = vld [vmem:[#allocation2 + $0x40] sm:$0xff]  ;;  %v49_v37 = vld [vmem:[#allocation2 + $0x50] sm:$0xff] }
  0x1c   :  { %1605 = vmatpush3.bf16.msk.msra.mxu0 %vm1807_vm3, %v1600_v16  ;;  %v1610_v38 = vpack.c.bf16 %v49_v37, %v48_v36  ;;  %v50_v40 = vld [vmem:[#allocation2 + $0x60] sm:$0xff]  ;;  %v51_v41 = vld [vmem:[#allocation2 + $0x70] sm:$0xff] }
  0x1d   :  { %1643 = vmatprep.subr.bf16.mxu0 %v1762_v21  ;;  %v1613_v42 = vpack.c.bf16 %v51_v41, %v50_v40  ;;  %v52_v43 = vld [vmem:[#allocation2 + $0x80] sm:$0xff]  ;;  %v53_v44 = vld [vmem:[#allocation2 + $0x90] sm:$0xff] }
  0x1e   :  { %v1616_v45 = vpack.c.bf16 %v53_v44, %v52_v43  ;;  %v54_v46 = vld [vmem:[#allocation2 + $0xa0] sm:$0xff]  ;;  %v55_v47 = vld [vmem:[#allocation2 + $0xb0] sm:$0xff]  ;;  %v780_v44 = vld [vmem:[#allocation2 + $0x488] sm:$0xff] }
  0x1f   :  { %v1619_v48 = vpack.c.bf16 %v55_v47, %v54_v46  ;;  %v56_v49 = vld [vmem:[#allocation2 + $0xc0] sm:$0xff]  ;;  %v57_v50 = vld [vmem:[#allocation2 + $0xd0] sm:$0xff] }
  0x20   :  { %v1622_v51 = vpack.c.bf16 %v57_v50, %v56_v49  ;;  %v58_v52 = vld [vmem:[#allocation2 + $0xe0] sm:$0xff]  ;;  %v59_v53 = vld [vmem:[#allocation2 + $0xf0] sm:$0xff] }
  0x21   :  { %v1625_v54 = vpack.c.bf16 %v59_v53, %v58_v52  ;;  %v60_v55 = vld [vmem:[#allocation2 + $0x100] sm:$0xff]  ;;  %v61_v56 = vld [vmem:[#allocation2 + $0x110] sm:$0xff]  ;;  %v786_v53 = vld [vmem:[#allocation2 + $0x4b8] sm:$0xff] }
  0x22   :  { %v1628_v57 = vpack.c.bf16 %v61_v56, %v60_v55  ;;  %v62_v58 = vld [vmem:[#allocation2 + $0x120] sm:$0xff]  ;;  %v63_v59 = vld [vmem:[#allocation2 + $0x130] sm:$0xff] }
  0x23   :  { %v1631_v60 = vpack.c.bf16 %v63_v59, %v62_v58  ;;  %v64_v61 = vld [vmem:[#allocation2 + $0x140] sm:$0xff]  ;;  %v65_v62 = vld [vmem:[#allocation2 + $0x150] sm:$0xff] }
  0x24   :  { %v1634_v63 = vpack.c.bf16 %v65_v62, %v64_v61  ;;  %v66_v3 = vld [vmem:[#allocation2 + $0x160] sm:$0xff]  ;;  %v67_v8 = vld [vmem:[#allocation2 + $0x170] sm:$0xff] }
  0x25   :  { %v1637_v9 = vpack.c.bf16 %v67_v8, %v66_v3  ;;  %v777_v40 = vld [vmem:[#allocation2 + $0x460] sm:$0xff]  ;;  %v781_v49 = vld [vmem:[#allocation2 + $0x490] sm:$0xff] }
  0x26   :  { %v783_v55 = vld [vmem:[#allocation2 + $0x4a0] sm:$0xff]  ;;  %v785_v56 = vld [vmem:[#allocation2 + $0x4b0] sm:$0xff] }
  0x27   :  { %v775_v58 = vld [vmem:[#allocation2 + $0x440] sm:$0xff]  ;;  %v1652_v59 = vpack.c.bf16 %v785_v56, %v783_v55 }
  0x28   :  { %v741_v2 = vld [vmem:[#allocation2 + $0x220] ss:$0 sm:$0xff] }
  0x29   :  { %v759_v3 = vld [vmem:[#allocation2 + $0x340] sm:$0xff] }
  0xeb   :  { %v1537_v25 = vpop.f32.mrb[0].mxu1 }
  0xec   :  { %v1532_v26 = vpop.f32.mrb[0].mxu0  ;;  %v242_v28 = vpop.f32.mrb[1].mxu1 }
  0xed   :  { %v158_v29 = vpop.f32.mrb[1].mxu0  ;;  %1429 = vmatmul.mubr.msk.f32.vlgmr.msra.gmra.mrb[2].mxu1 %vm251_vm6, %v242_v28  ;;  %1542 = vmatprep.mubr.msk.f32.mxu0 %vm251_vm6, %v242_v28  ;;  %v164_v35 = vadd.f32 %v1532_v26, %v45_v24  ;;  %v70_v26 = vld [vmem:[#allocation2 + $0x1a0] sm:$0xff] }
  0xee   :  { %v159_v30 = vadd.f32 %v158_v29, %v45_v24  ;;  %1543 = vmatmul.mubr.msk.f32.vlgmr.msra.gmra.mrb[2].mxu0 %vm251_vm6, %v1537_v25  ;;  %335 = vmatprep.mubr.f32.mxu1 %v1761_v17 }
  0xef   :  { %1599 = vmatpush1.bf16.msra.mxu1 %v1598_v27  ;;  %v168_v39 = vmax.f32 %v164_v35, 0.0  ;;  %v71_v27 = vld [vmem:[#allocation2 + $0x1b0] sm:$0x7]  ;;  %1556 = vmatprep.mubr.msk.f32.mxu0 %vm1763_vm9, %v1761_v17 }
  0xf0   :  { %1606 = vmatprep.subr.bf16.mxu1 %v1762_v21  ;;  %v167_v33 = vmax.f32 %v159_v30, 0.0  ;;  %v1640_v28 = vpack.c.bf16 %v71_v27, %v70_v26  ;;  %v747_v26 = vld [vmem:[#allocation2 + $0x280] sm:$0xff]  ;;  %v764_v27 = vld [vmem:[#allocation2 + $0x390] sm:$0xff] }
  0xf1   :  { %1430 = vmatmul.mubr.msk.f32.gmra.mrb[4].mxu1 %vm251_vm6, %v1537_v25 }
  0xf2   :  { %413 = vmatprep.mubr.f32.mxu1 %v1761_v17 }
  0xf5   :  { %1431 = vmatmul.mubr.msk.f32.vlgmr.msra.gmra.mrb[6].mxu1 %vm342_vm7, %v167_v33 }
  0xf6   :  { %419 = vmatprep.mubr.f32.mxu1 %v1761_v17  ;;  %1608 = vmatpush1.bf16.msra.mxu1 %v1607_v34  ;;  %v1892_v34 = vld [vmem:[%s1942_s3] sm:$0xf]  ;;  %s1764_s3 = smov [#allocation5]  }
  0xf7   :  { %1609 = vmatprep.subr.bf16.mxu1 %v1762_v21  ;;  %v40_v36 = vunpack.c.l.bf16 %v1892_v34  ;;  %s1413_s13 = sshll.u32 %s1764_s3, 4  ;;  %s1414_s13 = int_to_ptr.vmem [resolvable:$true] %s1413_s13 }
  0xf8   :  { %s1731_s14 = scalar_lea.vmem %s1414_s13, 128  ;;  %p1736_p9 = scmp.lt.s32.totalorder %s1414_s13, %s1414_s13 }
  0xf9   :  { %1432 = vmatmul.mubr.msk.f32.gmra.mrb[8].mxu1 %vm342_vm7, %v168_v39  ;;  %v776_v39 = vld [vmem:[#allocation2 + $0x450] sm:$0xff]  ;;  %p1732_p8 = scmp.ne.s32.totalorder %s1414_s13, %s1731_s14  ;;  %p1737_p10 = scmp.lt.s32.totalorder %s1731_s14, %s1731_s14 }
  0xfa   :  { %1611 = vmatpush1.bf16.msra.mxu1 %v1610_v38  ;;  %v740_v38 = vld [vmem:[#allocation2 + $0x210] sm:$0xf]  ;;  %v1691_v41 = vpack.c.bf16 %v777_v40, %v776_v39 }
  0xfb   :  { %1612 = vmatprep.subr.bf16.mxu1 %v1762_v21  ;;  %v768_v40 = vld [vmem:[#allocation2 + $0x3d0] sm:$0xff]  ;;  %p1738_p11 = por %p1737_p10, %p1736_p9 }
  0xfd   :  { %p1739_p12 = pnand %p1738_p11, %p1732_p8 }
  0xfe   :  { %1614 = vmatpush1.bf16.msra.mxu1 %v1613_v42 }
  0xff   :  { %1615 = vmatprep.subr.bf16.mxu1 %v1762_v21 }
 0x102   :  { %1617 = vmatpush1.bf16.msra.mxu1 %v1616_v45  ;;  %v782_v45 = vld [vmem:[#allocation2 + $0x498] sm:$0xff] }
 0x103   :  { %1618 = vmatprep.subr.bf16.mxu1 %v1762_v21 }
 0x106   :  { %1620 = vmatpush1.bf16.msra.mxu1 %v1619_v48  ;;  %v779_v48 = vld [vmem:[#allocation2 + $0x480] sm:$0xff] }
 0x107   :  { %1621 = vmatprep.subr.bf16.mxu1 %v1762_v21  ;;  %v1648_v52 = vpack.c.bf16 %v781_v49, %v779_v48  ;;  %v754_v48 = vld [vmem:[#allocation2 + $0x2f0] sm:$0xff]  ;;  %v755_v49 = vld [vmem:[#allocation2 + $0x300] sm:$0xff] }
 0x10a   :  { %1623 = vmatpush1.bf16.msra.mxu1 %v1622_v51  ;;  %v1646_v51 = vpack.c.bf16 %v782_v45, %v780_v44  ;;  %v770_v45 = vld [vmem:[#allocation2 + $0x3f0] sm:$0xff] }
 0x10b   :  { %1624 = vmatprep.subr.bf16.mxu1 %v1762_v21 }
 0x10e   :  { %1626 = vmatpush1.bf16.msra.mxu1 %v1625_v54 }
 0x10f   :  { %1627 = vmatprep.subr.bf16.mxu1 %v1762_v21 }
 0x112   :  { %1629 = vmatpush1.bf16.msra.mxu1 %v1628_v57  ;;  %v774_v57 = vld [vmem:[#allocation2 + $0x430] sm:$0xff] }
 0x113   :  { %1630 = vmatprep.subr.bf16.mxu1 %v1762_v21  ;;  %v1654_v61 = vpack.c.bf16 %v775_v58, %v774_v57 }
 0x116   :  { %1632 = vmatpush1.bf16.msra.mxu1 %v1631_v60 }
 0x117   :  { %1633 = vmatprep.subr.bf16.mxu1 %v1762_v21 }
 0x11a   :  { %1635 = vmatpush1.bf16.msra.mxu1 %v1634_v63  ;;  %v758_v63 = vld [vmem:[#allocation2 + $0x330] sm:$0xff] }
 0x11b   :  { %1636 = vmatprep.subr.bf16.mxu1 %v1762_v21 }
 0x11e   :  { %1638 = vmatpush1.bf16.msra.mxu1 %v1637_v9 }
 0x11f   :  { %1639 = vmatprep.subr.bf16.mxu1 %v1762_v21 }
 0x1c0   :  { %v331_v10 = vpop.f32.mrb[2].mxu1 }
 0x1c1   :  { %v333_v11 = vpop.f32.mrb[3].mxu1  ;;  %v1544_v12 = vpop.f32.mrb[2].mxu0 }
 0x1c2   :  { %v499_v13 = vpop.f32.mrb[3].mxu0 }
 0x1c4   :  { %v337_v14 = vpop.f32.mrb[4].mxu1 }
 0x1c5   :  { %v339_v15 = vpop.f32.mrb[5].mxu1 }
 0x1c8   :  { %v415_v16 = vpop.f32.mrb[6].mxu1 }
 0x1c9   :  { %v426_v18 = vmul.f32 %v415_v16, %v331_v10  ;;  %v417_v19 = vpop.f32.mrb[7].mxu1  ;;  %v1658_v10 = vpack.c.bf16 %v759_v3, %v758_v63 }
 0x1ca   :  { %v427_v20 = vmul.f32 %v417_v19, %v333_v11  ;;  %v744_v19 = vld [vmem:[#allocation2 + $0x250] sm:$0xff] }
 0x1cc   :  { %v421_v22 = vpop.f32.mrb[8].mxu1  ;;  %1436 = vmatprep.mubr.msk.f32.mxu1 %vm508_vm8, %v427_v20  ;;  %v745_v20 = vld [vmem:[#allocation2 + $0x260] sm:$0xff] }
 0x1cd   :  { %v428_v23 = vmul.f32 %v421_v22, %v337_v14  ;;  %v423_v24 = vpop.f32.mrb[9].mxu1  ;;  %580 = vmatmul.mubr.f32.vlgmr.msra.gmra.mrb[10].mxu1 %v426_v18  ;;  %v760_v14 = vld [vmem:[#allocation2 + $0x350] sm:$0xff] }
 0x1ce   :  { %v429_v25 = vmul.f32 %v423_v24, %v339_v15  ;;  %1642 = vmatpush3.bf16.msk.msra.mxu1 %vm1807_vm3, %v1640_v28  ;;  %v761_v15 = vld [vmem:[#allocation2 + $0x360] sm:$0xff]  ;;  %v762_v22 = vld [vmem:[#allocation2 + $0x370] sm:$0xff] }
 0x1cf   :  { %1690 = vmatprep.subr.bf16.mxu1 %v1762_v21  ;;  %v1662_v18 = vpack.c.bf16 %v761_v15, %v760_v14  ;;  %v765_v28 = vld [vmem:[#allocation2 + $0x3a0] sm:$0xff] }
 0x1d0   :  { %1437 = vmatprep.mubr.msk.f32.mxu1 %vm508_vm8, %v429_v25  ;;  %v746_v25 = vld [vmem:[#allocation2 + $0x270] sm:$0xff] }
 0x1d1   :  { %585 = vmatmul.mubr.f32.gmra.mrb[12].mxu1 %v428_v23  ;;  %v763_v23 = vld [vmem:[#allocation2 + $0x380] sm:$0xff] }
 0x1d2   :  { %1549 = vmatprep.mubr.msk.f32.mxu1 %vm1763_vm9, %v1761_v17  ;;  %v1666_v24 = vpack.c.bf16 %v763_v23, %v762_v22 }
 0x1d5   :  { %1550 = vmatmul.mubr.msk.f32.vlgmr.msra.gmra.mrb[14].mxu1 %vm251_vm6, %v1814_v1 }
 0x1d6   :  { %1580 = vmatprep.mubr.msk.f32.mxu1 %vm1763_vm9, %v1761_v17  ;;  %1692 = vmatpush3.bf16.msra.mxu1 %v1691_v41  ;;  %v769_v41 = vld [vmem:[#allocation2 + $0x3e0] sm:$0xff] }
 0x1d7   :  { %1693 = vmatprep.subr.bf16.mxu1 %v1762_v21  ;;  %v784_v21 = vld [vmem:[#allocation2 + $0x4a8] sm:$0xff] }
 0x1d8   :  { %v1650_v54 = vpack.c.bf16 %v786_v53, %v784_v21  ;;  %v757_v21 = vld [vmem:[#allocation2 + $0x320] sm:$0xff] }
 0x2a0   :  { %v581_v29 = vpop.f32.mrb[10].mxu1 }
 0x2a1   :  { %v582_v30 = vadd.f32 %v581_v29, %v499_v13  ;;  %v583_v31 = vpop.f32.mrb[11].mxu1  ;;  %v743_v13 = vld [vmem:[#allocation2 + $0x240] sm:$0xff]  ;;  %v1668_v29 = vpack.c.bf16 %v747_v26, %v746_v25 }
 0x2a2   :  { %v748_v31 = vld [vmem:[#allocation2 + $0x290] sm:$0xff] }
 0x2a4   :  { %v586_v0 = vpop.f32.mrb[12].mxu1 }
 0x2a5   :  { %v587_v32 = vadd.f32 %v1544_v12, %v586_v0  ;;  %v588_v33 = vpop.f32.mrb[13].mxu1  ;;  %v742_v12 = vld [vmem:[#allocation2 + $0x230] sm:$0xff]  ;;  %v749_v0 = vld [vmem:[#allocation2 + $0x2a0] sm:$0xff] }
 0x2a6   :  { %v1660_v16 = vpack.c.bf16 %v743_v13, %v742_v12  ;;  %v767_v33 = vld [vmem:[#allocation2 + $0x3c0] sm:$0xff] }
 0x2a7   :  { %v1644_v35 = vpack.c.bf16 %v587_v32, %v582_v30  ;;  %v1670_v30 = vpack.c.bf16 %v765_v28, %v764_v27  ;;  %v766_v32 = vld [vmem:[#allocation2 + $0x3b0] sm:$0xff] }
 0x2a8   :  { %v662_v1 = vpop.f32.mrb[14].mxu1 }
 0x2a9   :  { %1645 = vmatpush3.bf16.msra.mxu0 %v1644_v35  ;;  %v1551_v37 = vpop.f32.mrb[15].mxu1  ;;  %v1672_v35 = vpack.c.bf16 %v749_v0, %v748_v31 }
 0x2aa   :  { %1559 = vmatprep.subr.msk.mxu0 %vm88_vm1, %v740_v38  ;;  %v750_v37 = vld [vmem:[#allocation2 + $0x2b0] sm:$0xff] }
 0x2ac   :  { %1557 = vmatmul.mubr.msk.f32.vlgmr.msra.gmra.mrb[4].mxu0 %vm342_vm7, %v40_v36 }
 0x2ad   :  { %1561 = vmatprep.mubr.msk.f32.mxu0 %vm81_vm5, %v1828_v6  ;;  %1560 = vmatpush3.msk.msra.mxu0 %vm88_vm1, %v740_v38  ;;  %v72_v6 = vld [vmem:[#allocation2 + $0x1c0] ss:$0 sm:$0xff] }
 0x2ae   :  { %v663_v42 = vadd.f32 %v662_v1, %v72_v6  ;;  %v1674_v1 = vpack.c.bf16 %v767_v33, %v766_v32  ;;  %v751_v38 = vld [vmem:[#allocation2 + $0x2c0] sm:$0xff]  ;;  %v1678_v6 = vpack.c.bf16 %v769_v41, %v768_v40 }
 0x2af   :  { %v1676_v39 = vpack.c.bf16 %v751_v38, %v750_v37 }
 0x2b0   :  { %1562 = vmatmul.mubr.msk.f32.vlgmr.msra.gmra.mrb[6].mxu0 %vm81_vm5, %v1833_v7 }
 0x2b1   :  { %1566 = vmatprep.mubr.msk.f32.mxu0 %vm169_vm4, %v1456_v4 }
 0x37f   :  { %v735_v43 = vpop.f32.mrb[4].mxu0 }
 0x380   :  { %v736_v46 = vadd.f32 %v735_v43, %v663_v42  ;;  %v1558_v47 = vpop.f32.mrb[5].mxu0  ;;  %v752_v42 = vld [vmem:[#allocation2 + $0x2d0] sm:$0xff]  ;;  %v753_v43 = vld [vmem:[#allocation2 + $0x2e0] sm:$0xff] }
 0x381   :  { %v1680_v44 = vpack.c.bf16 %v753_v43, %v752_v42 }
 0x382   :  { %v739_v50 = vmax.f32 %v736_v46, 0.0  ;;  %v771_v46 = vld [vmem:[#allocation2 + $0x400] sm:$0xff] }
 0x383   :  { %v1563_v4 = vpop.f32.mrb[6].mxu0  ;;  %v1682_v47 = vpack.c.bf16 %v771_v46, %v770_v45 }
 0x384   :  { %1564 = vmatprep.subr.mxu0 %v739_v50  ;;  %1581 = vmatmul.mubr.msk.f32.vlgmr.msra.gmra.mrb[16].mxu1 %vm342_vm7, %v739_v50  ;;  %v856_v7 = vpop.f32.mrb[7].mxu0  ;;  %v862_v8 = vadd.f32 %v1563_v4, %v741_v2 }
 0x385   :  { %1565 = vmatpush3.msra.mxu0 %v739_v50  ;;  %1587 = vmatprep.mubr.msk.f32.mxu1 %vm1763_vm9, %v1761_v17  ;;  %v1684_v50 = vpack.c.bf16 %v755_v49, %v754_v48 }
 0x386   :  { %1567 = vmatmul.mubr.msk.f32.vlgmr.msra.gmra.mrb[8].mxu0 %vm169_vm4, %v1457_v5  ;;  %1647 = vmatprep.subr.bf16.mxu0 %v1646_v51  ;;  %v857_v5 = vadd.f32 %v856_v7, %v741_v2  ;;  %v866_v11 = vmax.f32 %v862_v8, 0.0  ;;  %v772_v51 = vld [vmem:[#allocation2 + $0x410] sm:$0xff] }
 0x387   :  { %1649 = vmatpush1.bf16.msra.mxu0 %v1648_v52  ;;  %1012 = vmatprep.mubr.f32.mxu0 %v1761_v17  ;;  %v773_v52 = vld [vmem:[#allocation2 + $0x420] sm:$0xff]  ;;  %v756_v7 = vld [vmem:[#allocation2 + $0x310] sm:$0xff] }
 0x388   :  { %1651 = vmatprep.subr.bf16.mxu0 %v1650_v54  ;;  %v865_v9 = vmax.f32 %v857_v5, 0.0  ;;  %v1686_v4 = vpack.c.bf16 %v773_v52, %v772_v51  ;;  %v1688_v53 = vpack.c.bf16 %v757_v21, %v756_v7 }
 0x459   :  { %v1568_v60 = vpop.f32.mrb[8].mxu0 }
 0x45a   :  { %v933_v62 = vpop.f32.mrb[9].mxu0 }
 0x45b   :  { %1446 = vmatmul.mubr.msk.f32.vlgmr.msra.gmra.mrb[10].mxu0 %vm342_vm7, %v933_v62 }
 0x45c   :  { %1018 = vmatprep.mubr.f32.mxu0 %v1761_v17  ;;  %1653 = vmatpush1.bf16.msra.mxu0 %v1652_v59 }
 0x45d   :  { %1655 = vmatprep.subr.bf16.mxu0 %v1654_v61 }
 0x45f   :  { %1447 = vmatmul.mubr.msk.f32.gmra.mrb[12].mxu0 %vm342_vm7, %v1568_v60 }
 0x460   :  { %1095 = vmatprep.mubr.f32.mxu0 %v1761_v17 }
 0x463   :  { %1448 = vmatmul.mubr.msk.f32.vlgmr.msra.gmra.mrb[14].mxu0 %vm342_vm7, %v865_v9 }
 0x464   :  { %1101 = vmatprep.mubr.f32.mxu0 %v1761_v17  ;;  %1657 = vmatpush3.bf16.msra.mxu0 %v1654_v61  ;;  %v1664_v17 = vpack.c.bf16 %v745_v20, %v744_v19  ;;  %v778_v19 = vld [vmem:[#allocation2 + $0x470] ss:$0 sm:$0xff] }
 0x465   :  { %1659 = vmatprep.subr.bf16.mxu0 %v1658_v10 }
 0x467   :  { %1449 = vmatmul.mubr.msk.f32.gmra.mrb[16].mxu0 %vm342_vm7, %v866_v11 }
 0x468   :  { %1573 = vmatprep.mubr.msk.f32.mxu0 %vm342_vm7, %v933_v62 }
 0x46b   :  { %1574 = vmatmul.mubr.msk.f32.vlgmr.msra.gmra.mrb[18].mxu0 %vm342_vm7, %v1568_v60 }
 0x46c   :  { %1661 = vmatpush3.bf16.msra.mxu0 %v1660_v16 }
 0x46d   :  { %1663 = vmatprep.subr.bf16.mxu0 %v1662_v18 }
 0x470   :  { %1665 = vmatpush3.bf16.msra.mxu0 %v1664_v17 }
 0x471   :  { %1667 = vmatprep.subr.bf16.mxu0 %v1666_v24 }
 0x474   :  { %1669 = vmatpush3.bf16.msra.mxu0 %v1668_v29 }
 0x475   :  { %1671 = vmatprep.subr.bf16.mxu0 %v1670_v30 }
 0x478   :  { %1673 = vmatpush3.bf16.msra.mxu0 %v1672_v35 }
 0x479   :  { %1675 = vmatprep.subr.bf16.mxu0 %v1674_v1 }
 0x47c   :  { %1677 = vmatpush3.bf16.msra.mxu0 %v1676_v39 }
 0x47d   :  { %1679 = vmatprep.subr.bf16.mxu0 %v1678_v6 }
 0x480   :  { %1681 = vmatpush3.bf16.msra.mxu0 %v1680_v44 }
 0x481   :  { %1683 = vmatprep.subr.bf16.mxu0 %v1682_v47 }
 0x484   :  { %1685 = vmatpush3.bf16.msra.mxu0 %v1684_v50 }
 0x485   :  { %1687 = vmatprep.subr.bf16.mxu0 %v1686_v4 }
 0x488   :  { %1689 = vmatpush3.bf16.msra.mxu0 %v1688_v53 }
 0x52e   :  { %v1014_v54 = vpop.f32.mrb[10].mxu0 }
 0x52f   :  { %v1016_v55 = vpop.f32.mrb[11].mxu0 }
 0x532   :  { %v1020_v56 = vpop.f32.mrb[12].mxu0 }
 0x533   :  { %v1022_v57 = vpop.f32.mrb[13].mxu0 }
 0x536   :  { %v1097_v58 = vpop.f32.mrb[14].mxu0 }
 0x537   :  { %v1108_v59 = vmul.f32 %v1097_v58, %v1014_v54  ;;  %v1099_v60 = vpop.f32.mrb[15].mxu0 }
 0x538   :  { %v1109_v61 = vmul.f32 %v1099_v60, %v1016_v55 }
 0x53a   :  { %v1103_v2 = vpop.f32.mrb[16].mxu0  ;;  %1251 = vmatprep.mubr.f32.mxu0 %v1109_v61 }
 0x53b   :  { %v1110_v62 = vmul.f32 %v1103_v2, %v1020_v56  ;;  %v1105_v5 = vpop.f32.mrb[17].mxu0  ;;  %1252 = vmatmul.mubr.f32.vlgmr.msra.gmra.mrb[20].mxu0 %v1108_v59 }
 0x53c   :  { %v1111_v63 = vmul.f32 %v1105_v5, %v1022_v57 }
 0x53e   :  { %v1575_v3 = vpop.f32.mrb[18].mxu0  ;;  %1256 = vmatprep.mubr.f32.mxu0 %v1111_v63 }
 0x53f   :  { %v1178_v8 = vpop.f32.mrb[19].mxu0  ;;  %1257 = vmatmul.mubr.f32.gmra.mrb[22].mxu0 %v1110_v62 }
 0x60e   :  { %v1516_v9 = vpop.f32.mrb[20].mxu0 }
 0x60f   :  { %v1517_v10 = vpop.f32.mrb[21].mxu0 }
 0x610   :  { %v1518_v11 = vadd.f32 %v1517_v10, %v1516_v9 }
 0x612   :  { %v1254_v12 = vadd.f32 %v1518_v11, %v1178_v8  ;;  %v1519_v13 = vpop.f32.mrb[22].mxu0 }
 0x613   :  { %v1520_v14 = vpop.f32.mrb[23].mxu0 }
 0x614   :  { %v1521_v15 = vadd.f32 %v1520_v14, %v1519_v13 }
 0x616   :  { %v1259_v16 = vadd.f32 %v1575_v3, %v1521_v15 }
 0x618   :  { %v1694_v18 = vpack.c.bf16 %v1259_v16, %v1254_v12 }
 0x61a   :  { %1695 = vmatpush3.bf16.msra.mxu1 %v1694_v18 }
 0x61d   :  { %1588 = vmatmul.mubr.msk.f32.vlgmr.msra.gmra.mrb[16].mxu1 %vm342_vm7, %v40_v36 }
 0x6f0   :  { %v1401_v20 = vpop.f32.mrb[16].mxu1 }
 0x6f1   :  { %v1698_v22 = vadd.f32 %v1401_v20, %v778_v19  ;;  %v1589_v23 = vpop.f32.mrb[17].mxu1 }
 0x6f3   :  { %v1405_v17 = vmax.f32 %v1698_v22, 0.0 }
 0x6f5   :  { %1406 = vst [vmem:[#allocation5] sm:$0xff] %v1405_v17 }
 0x6f6   :  { %1742 = shalt.err (!%p1739_p12)
}
 0x6f7   :  { %s1743_s17 = scalar_lea.hbm %s1944_s5, 128 }
 0x6f8   :  { %p1744_p13 = scmp.ne.s32.totalorder %s1944_s5, %s1743_s17  ;;  %p1747_p0 = scmp.lt.u32.totalorder %s1743_s17, %s1944_s5 }
 0x6fa   :  { %p1749_p1 = pnand %p1747_p0, %p1744_p13 }
 0x6fc   :  { %1752 = shalt.err (!%p1749_p1)
}
 0x6fd   :  { %1416 = dma.vmem_to_hbm [thread:$0]  %s1414_s13, 128, %s1944_s5, [#allocation4]  }
 0x6fe   :  { %1755 = dma.done.wait [#allocation4], 128  }
 0x6ff   :  { %1756 = vsyncadd [#allocation4], 4294967168 }
 0x700   :  { %1420 = vsyncpa [#allocation3], 1 }
 0x701   :  { %1421 = vsyncpa [#allocation4], 1 }

</bundles_post_ra>
